<compile_context>
chip_gen: v7x
topology: tpu7x:2x2x1
jax: 0.10.0
libtpu: 0.0.40
codegen_flags: <defaults>
</compile_context>

<pallas_src>
import jax
import jax.numpy as jnp
from jax.experimental import pallas as pl
from jax.experimental.pallas import tpu as pltpu

K = 28 * 28      # 784, input features (full last dim -> legal block width)
H1 = 128
H2 = 64
NOUT = 10        # logits (full last dim of the output -> legal block width)


def _round_up(v, m):
    return ((v + m - 1) // m) * m


def _choose_tile(B, tile_b):
    """Row tile TB (multiple of 16) and padded batch Bp = n_steps * TB.

    Bounds padding waste to <16 rows and, for larger batches, guarantees at
    least 2 grid steps so the "parallel" axis can shard across both v7x TCs."""
    n = max(1, -(-B // tile_b))          # steps needed to keep tiles <= tile_b
    if n == 1 and B >= 256:
        n = 2                            # let megacore / v7x split the batch
    tb = _round_up(-(-B // n), 16)
    return tb, n * tb


def mlp_kernel(x_ref, w1_ref, b1_ref, w2_ref, b2_ref, w3_ref, b3_ref, o_ref):
    # fc1 + relu: f32 x streamed from HBM, cast to bf16 for the MXU,
    # f32 accumulation; bias add / ReLU in f32.
    x = x_ref[...].astype(jnp.bfloat16)
    h1 = jnp.dot(x, w1_ref[...], preferred_element_type=jnp.float32)
    h1 = jnp.maximum(h1 + b1_ref[...], 0.0)
    # fc2 + relu
    h2 = jnp.dot(h1.astype(jnp.bfloat16), w2_ref[...],
                 preferred_element_type=jnp.float32)
    h2 = jnp.maximum(h2 + b2_ref[...], 0.0)
    # fc3 (logits written directly, 10 columns)
    h3 = jnp.dot(h2.astype(jnp.bfloat16), w3_ref[...],
                 preferred_element_type=jnp.float32)
    o_ref[...] = (h3 + b3_ref[...]).astype(o_ref.dtype)


def prepare_params(params):
    """One-time param prep (do at load time, NOT per forward call):
    bf16 weights in (in, out) layout, f32 (1, out) biases."""
    return dict(
        w1=params["w1"].astype(jnp.bfloat16),
        w2=params["w2"].astype(jnp.bfloat16),
        w3=params["w3"].astype(jnp.bfloat16),
        b1=params["b1"].reshape(1, -1).astype(jnp.float32),
        b2=params["b2"].reshape(1, -1).astype(jnp.float32),
        b3=params["b3"].reshape(1, -1).astype(jnp.float32),
    )


def net_forward(x, prep, *, tile_b=1024):
    """x: (..., 28*28)-flattenable float array (like x.view(-1, 28*28)).
    prep: output of prepare_params. Returns (B, 10) float32 logits."""
    x = x.reshape(-1, K).astype(jnp.float32)
    B = x.shape[0]
    TB, Bp = _choose_tile(B, tile_b)
    if Bp != B:
        x = jnp.zeros((Bp, K), jnp.float32).at[:B].set(x)

    n_steps = Bp // TB
    const = lambda a: pl.BlockSpec(a.shape, lambda i: (0, 0))

    # Triple-buffer the x stream only when the grid is long enough to benefit.
    if n_steps >= 3:
        x_spec = pl.BlockSpec((TB, K), lambda i: (i, 0),
                              pipeline_mode=pl.Buffered(3))
    else:
        x_spec = pl.BlockSpec((TB, K), lambda i: (i, 0))

    flops = 2 * Bp * (K * H1 + H1 * H2 + H2 * NOUT)
    bytes_accessed = (Bp * K * 4 + Bp * NOUT * 4
                      + (K * H1 + H1 * H2 + H2 * NOUT) * 2
                      + (H1 + H2 + NOUT) * 4)

    out = pl.pallas_call(
        mlp_kernel,
        out_shape=jax.ShapeDtypeStruct((Bp, NOUT), jnp.float32),
        grid_spec=pltpu.PrefetchScalarGridSpec(
            num_scalar_prefetch=0,
            grid=(n_steps,),
            in_specs=[
                x_spec,                                   # stream x rows (f32)
                const(prep["w1"]), const(prep["b1"]),     # VMEM-resident
                const(prep["w2"]), const(prep["b2"]),
                const(prep["w3"]), const(prep["b3"]),
            ],
            out_specs=pl.BlockSpec((TB, NOUT), lambda i: (i, 0)),
        ),
        compiler_params=pltpu.CompilerParams(
            dimension_semantics=("parallel",),
            vmem_limit_bytes=48 << 20),
        cost_estimate=pl.CostEstimate(
            flops=flops, transcendentals=0, bytes_accessed=bytes_accessed),
    )(x, prep["w1"], prep["b1"], prep["w2"], prep["b2"],
      prep["w3"], prep["b3"])

    return out if Bp == B else out[:B]


def init_params(key):
    """Deterministic synthetic params with the same shapes as the PyTorch Net.
    PyTorch nn.Linear stores weight as (out, in); we keep the transposed
    (in, out) form for the x @ W convention used in the kernel."""
    ks = jax.random.split(key, 6)

    def lin(kw, kb, fan_in, fan_out):
        bound = 1.0 / (fan_in ** 0.5)   # same scale as torch's default init
        w = jax.random.uniform(kw, (fan_in, fan_out), jnp.float32, -bound, bound)
        b = jax.random.uniform(kb, (1, fan_out), jnp.float32, -bound, bound)
        return w, b

    w1, b1 = lin(ks[0], ks[1], 28 * 28, 128)
    w2, b2 = lin(ks[2], ks[3], 128, 64)
    w3, b3 = lin(ks[4], ks[5], 64, 10)
    return dict(w1=w1, b1=b1, w2=w2, b2=b2, w3=w3, b3=b3)


def net_forward_ref(x, p, *, bf16_path):
    """Pure-JAX reference. bf16_path=True mirrors the kernel's bf16 MXU data
    path (f32 accumulate); bf16_path=False is the exact f32 module math."""
    f32 = jnp.float32
    if bf16_path:
        cast = lambda a: a.astype(jnp.bfloat16).astype(f32)
    else:
        cast = lambda a: a
    h1 = jnp.maximum(cast(x) @ cast(p["w1"]) + p["b1"], 0.0)
    h2 = jnp.maximum(cast(h1) @ cast(p["w2"]) + p["b2"], 0.0)
    return cast(h2) @ cast(p["w3"]) + p["b3"]


if __name__ == "__main__":
    key = jax.random.PRNGKey(0)
    kx, kp = jax.random.split(key)

    batch = 2
    # Input like an MNIST image batch (B, 1, 28, 28), flattened as in forward().
    x_img = jax.random.normal(kx, (batch, 1, 28, 28), jnp.float32)
    x = x_img.reshape(-1, 28 * 28)

    params = init_params(kp)
    prep = prepare_params(params)   # one-time weight prep (hoisted out of fwd)

    out = jax.block_until_ready(net_forward(x, prep))
    assert out.shape == (batch, 10)

    # Tight check against a reference that mirrors the kernel's bf16 data path.
    ref_bf16 = net_forward_ref(x, params, bf16_path=True)
    assert jnp.allclose(out, ref_bf16, atol=2e-3, rtol=2e-3)

    # Module-semantics check against the pure f32 PyTorch-equivalent forward
    # (tolerance reflects the intentional bf16 MXU-input precision).
    ref_f32 = net_forward_ref(x, params, bf16_path=False)
    assert jnp.allclose(out, ref_f32, atol=5e-2, rtol=5e-2)

    print("KERNEL_OK")
</pallas_src>

<mosaic_0001>
module attributes {stable_mosaic.version = 11 : i64} {
  func.func @mlp_kernel(%arg0: i32, %arg1: memref<16x784xf32, #tpu.memory_space<vmem>>, %arg2: memref<784x128xbf16, #tpu.memory_space<vmem>>, %arg3: memref<1x128xf32, #tpu.memory_space<vmem>>, %arg4: memref<128x64xbf16, #tpu.memory_space<vmem>>, %arg5: memref<1x64xf32, #tpu.memory_space<vmem>>, %arg6: memref<64x10xbf16, #tpu.memory_space<vmem>>, %arg7: memref<1x10xf32, #tpu.memory_space<vmem>>, %arg8: memref<16x10xf32, #tpu.memory_space<vmem>>) attributes {dimension_semantics = [#tpu.dimension_semantics<parallel>], iteration_bounds = array<i64: 1>, scalar_prefetch = 0 : i64, scratch_operands = 0 : i64, tpu.core_type = #tpu.core_type<tc>, window_params = [{transform_indices = @transform_0, window_bounds = array<i64: 16, 784>}, {pipeline_mode = #tpu.pipeline_mode<synchronous>, transform_indices = @transform_1, window_bounds = array<i64: 784, 128>}, {pipeline_mode = #tpu.pipeline_mode<synchronous>, transform_indices = @transform_2, window_bounds = array<i64: 1, 128>}, {pipeline_mode = #tpu.pipeline_mode<synchronous>, transform_indices = @transform_3, window_bounds = array<i64: 128, 64>}, {pipeline_mode = #tpu.pipeline_mode<synchronous>, transform_indices = @transform_4, window_bounds = array<i64: 1, 64>}, {pipeline_mode = #tpu.pipeline_mode<synchronous>, transform_indices = @transform_5, window_bounds = array<i64: 64, 10>}, {pipeline_mode = #tpu.pipeline_mode<synchronous>, transform_indices = @transform_6, window_bounds = array<i64: 1, 10>}, {transform_indices = @transform_7, window_bounds = array<i64: 16, 10>}]} {
    %c0 = arith.constant 0 : index
    %c0_0 = arith.constant 0 : index
    %0 = vector.load %arg1[%c0, %c0_0] : memref<16x784xf32, #tpu.memory_space<vmem>>, vector<16x784xf32>
    %1 = arith.truncf %0 : vector<16x784xf32> to vector<16x784xbf16>
    %c0_1 = arith.constant 0 : index
    %c0_2 = arith.constant 0 : index
    %2 = vector.load %arg2[%c0_1, %c0_2] : memref<784x128xbf16, #tpu.memory_space<vmem>>, vector<784x128xbf16>
    %cst = arith.constant dense<0.000000e+00> : vector<16x128xf32>
    %3 = tpu.matmul %1, %2, %cst {dimension_numbers = #tpu.dot_dimension_numbers<[1], [0], [0], [1], [0, 0, 1, 1], [], []>} : vector<16x784xbf16>, vector<784x128xbf16>, vector<16x128xf32> -> vector<16x128xf32>
    %c0_3 = arith.constant 0 : index
    %c0_4 = arith.constant 0 : index
    %4 = vector.load %arg3[%c0_3, %c0_4] : memref<1x128xf32, #tpu.memory_space<vmem>>, vector<1x128xf32>
    %5 = vector.broadcast %4 : vector<1x128xf32> to vector<16x128xf32>
    %6 = arith.addf %3, %5 : vector<16x128xf32>
    %cst_5 = arith.constant 0.000000e+00 : f32
    %7 = vector.broadcast %cst_5 : f32 to vector<16x128xf32>
    %8 = arith.maximumf %6, %7 : vector<16x128xf32>
    %9 = arith.truncf %8 : vector<16x128xf32> to vector<16x128xbf16>
    %c0_6 = arith.constant 0 : index
    %c0_7 = arith.constant 0 : index
    %10 = vector.load %arg4[%c0_6, %c0_7] : memref<128x64xbf16, #tpu.memory_space<vmem>>, vector<128x64xbf16>
    %cst_8 = arith.constant dense<0.000000e+00> : vector<16x64xf32>
    %11 = tpu.matmul %9, %10, %cst_8 {dimension_numbers = #tpu.dot_dimension_numbers<[1], [0], [0], [1], [0, 0, 1, 1], [], []>} : vector<16x128xbf16>, vector<128x64xbf16>, vector<16x64xf32> -> vector<16x64xf32>
    %c0_9 = arith.constant 0 : index
    %c0_10 = arith.constant 0 : index
    %12 = vector.load %arg5[%c0_9, %c0_10] : memref<1x64xf32, #tpu.memory_space<vmem>>, vector<1x64xf32>
    %13 = vector.broadcast %12 : vector<1x64xf32> to vector<16x64xf32>
    %14 = arith.addf %11, %13 : vector<16x64xf32>
    %cst_11 = arith.constant 0.000000e+00 : f32
    %15 = vector.broadcast %cst_11 : f32 to vector<16x64xf32>
    %16 = arith.maximumf %14, %15 : vector<16x64xf32>
    %17 = arith.truncf %16 : vector<16x64xf32> to vector<16x64xbf16>
    %c0_12 = arith.constant 0 : index
    %c0_13 = arith.constant 0 : index
    %18 = vector.load %arg6[%c0_12, %c0_13] : memref<64x10xbf16, #tpu.memory_space<vmem>>, vector<64x10xbf16>
    %cst_14 = arith.constant dense<0.000000e+00> : vector<16x10xf32>
    %19 = tpu.matmul %17, %18, %cst_14 {dimension_numbers = #tpu.dot_dimension_numbers<[1], [0], [0], [1], [0, 0, 1, 1], [], []>} : vector<16x64xbf16>, vector<64x10xbf16>, vector<16x10xf32> -> vector<16x10xf32>
    %c0_15 = arith.constant 0 : index
    %c0_16 = arith.constant 0 : index
    %20 = vector.load %arg7[%c0_15, %c0_16] : memref<1x10xf32, #tpu.memory_space<vmem>>, vector<1x10xf32>
    %21 = vector.broadcast %20 : vector<1x10xf32> to vector<16x10xf32>
    %22 = arith.addf %19, %21 : vector<16x10xf32>
    %c0_17 = arith.constant 0 : index
    %c0_18 = arith.constant 0 : index
    %23 = vector.load %arg8[%c0_17, %c0_18] : memref<16x10xf32, #tpu.memory_space<vmem>>, vector<16x10xf32>
    tpu.vector_store %arg8[%c0_17, %c0_18], %22 {strides = array<i32>} : memref<16x10xf32, #tpu.memory_space<vmem>>, vector<16x10xf32>,
    return
  }
  func.func @transform_0(%arg0: i32) -> (i32, i32) {
    %c0_i32 = arith.constant 0 : i32
    %c0_i32_0 = arith.constant 0 : i32
    return %arg0, %c0_i32 : i32, i32
  }
  func.func @transform_1(%arg0: i32) -> (i32, i32) {
    %c0_i32 = arith.constant 0 : i32
    %c0_i32_0 = arith.constant 0 : i32
    %c0_i32_1 = arith.constant 0 : i32
    return %c0_i32, %c0_i32_0 : i32, i32
  }
  func.func @transform_2(%arg0: i32) -> (i32, i32) {
    %c0_i32 = arith.constant 0 : i32
    %c0_i32_0 = arith.constant 0 : i32
    %c0_i32_1 = arith.constant 0 : i32
    return %c0_i32, %c0_i32_0 : i32, i32
  }
  func.func @transform_3(%arg0: i32) -> (i32, i32) {
    %c0_i32 = arith.constant 0 : i32
    %c0_i32_0 = arith.constant 0 : i32
    %c0_i32_1 = arith.constant 0 : i32
    return %c0_i32, %c0_i32_0 : i32, i32
  }
  func.func @transform_4(%arg0: i32) -> (i32, i32) {
    %c0_i32 = arith.constant 0 : i32
    %c0_i32_0 = arith.constant 0 : i32
    %c0_i32_1 = arith.constant 0 : i32
    return %c0_i32, %c0_i32_0 : i32, i32
  }
  func.func @transform_5(%arg0: i32) -> (i32, i32) {
    %c0_i32 = arith.constant 0 : i32
    %c0_i32_0 = arith.constant 0 : i32
    %c0_i32_1 = arith.constant 0 : i32
    return %c0_i32, %c0_i32_0 : i32, i32
  }
  func.func @transform_6(%arg0: i32) -> (i32, i32) {
    %c0_i32 = arith.constant 0 : i32
    %c0_i32_0 = arith.constant 0 : i32
    %c0_i32_1 = arith.constant 0 : i32
    return %c0_i32, %c0_i32_0 : i32, i32
  }
  func.func @transform_7(%arg0: i32) -> (i32, i32) {
    %c0_i32 = arith.constant 0 : i32
    %c0_i32_0 = arith.constant 0 : i32
    return %arg0, %c0_i32 : i32, i32
  }
}

</mosaic_0001>

<bundles_post_ra>
// kernel: tpu_custom_call.1
= control target key start
LH: loop header
LB: loop body
LE: loop exit
PB: predicated region body
PF: predicated region fallthrough
CT: control target
= control target key end

     0   :  { %12 = vsyncpa [#allocation3], 0  ;;  %s1333_s0 = inlined_call_operand.vmem [shape: f32[16,784], index: 0, kind: input, shape index: {}]   ;;  %s1334_s1 = inlined_call_operand.hbm [shape: bf16[784,128], index: 1, kind: input, shape index: {}]   ;;  %s1335_s2 = inlined_call_operand.vmem [shape: f32[1,128], index: 2, kind: input, shape index: {}]   ;;  %s1336_s3 = inlined_call_operand.vmem [shape: bf16[128,64], index: 3, kind: input, shape index: {}]   ;;  %s1337_s4 = inlined_call_operand.vmem [shape: f32[1,64], index: 4, kind: input, shape index: {}]   ;;  %s1338_s5 = inlined_call_operand.vmem [shape: bf16[64,10], index: 5, kind: input, shape index: {}]   ;;  %s1339_s6 = inlined_call_operand.vmem [shape: f32[1,10], index: 6, kind: input, shape index: {}]   ;;  %s1340_s7 = inlined_call_operand.hbm [shape: f32[16,10], index: 7, kind: output, shape index: {}]  }
   0x1   :  { %13 = vsyncpa [#allocation4], 0  ;;  %s1155_s24 = smov [#allocation2]   ;;  %s1107_s28 = scalar_lea.hbm %s1334_s1, 6272 }
   0x2   :  { %s21_s25 = sshll.u32 %s1155_s24, 4  ;;  %p1108_p0 = scmp.ne.s32.totalorder %s1334_s1, %s1107_s28  ;;  %s22_s25 = int_to_ptr.vmem [resolvable:$true] %s21_s25 }
   0x3   :  { %p1111_p1 = scmp.lt.u32.totalorder %s1107_s28, %s1334_s1 }
   0x5   :  { %p1113_p2 = pnand %p1111_p1, %p1108_p0 }
   0x7   :  { %1116 = shalt.err (!%p1113_p2)
}
   0x8   :  { %s1117_s10 = scalar_lea.vmem %s22_s25, 6272  ;;  %p1122_p4 = scmp.lt.s32.totalorder %s22_s25, %s22_s25 }
   0x9   :  { %p1118_p3 = scmp.ne.s32.totalorder %s22_s25, %s1117_s10  ;;  %p1123_p5 = scmp.lt.s32.totalorder %s1117_s10, %s1117_s10 }
   0xb   :  { %p1124_p6 = por %p1123_p5, %p1122_p4 }
   0xd   :  { %p1125_p7 = pnand %p1124_p6, %p1118_p3 }
   0xf   :  { %1128 = shalt.err (!%p1125_p7)
}
  0x10   :  { %s1156_s11 = smov 64   ;;  %s1157_s12 = smov 4  }
  0x11   :  { %27 = dma.hbm_to_vmem [thread:$0]  %s1334_s1, 6272, %s22_s25, [#allocation3], %s1156_s11, %s1156_s11, %s1157_s12  }
  0x12   :  { %1151 = dma.done.wait [#allocation3], 6272  }
  0x13   :  { %1152 = vsyncadd [#allocation3], 4294961024  ;;  %v1046_v0 = vld [vmem:[#allocation2 + $0x40] sm:$0xff]   ;;  %v1050_v4 = vld [vmem:[#allocation2 + $0x48] sm:$0xff]   ;;  %v1158_v43 = vmov 0.0   ;;  %vm1159_vm0 = vmmov 0  }
  0x14   :  { %v1047_v1 = vld [vmem:[#allocation2] sm:$0xff]   ;;  %918 = vmatprep.subr.bf16.mxu0 %v1046_v0  ;;  %v1051_v5 = vld [vmem:[#allocation2 + $0x8] sm:$0xff]   ;;  %v1054_v8 = vld [vmem:[#allocation2 + $0x50] sm:$0xff]   ;;  %vm462_vm1 = vcmask 130048   ;;  %vm787_vm2 = vcmask 523264   ;;  %vm832_vm3 = vcmask 80896  }
  0x15   :  { %v1048_v2 = vld [vmem:[#allocation2 + $0xc0] sm:$0xff]   ;;  %919 = vmatpush3.bf16.msra.mxu0 %v1047_v1  ;;  %v1052_v6 = vld [vmem:[#allocation2 + $0xc8] sm:$0xff]   ;;  %v1055_v9 = vld [vmem:[#allocation2 + $0x10] sm:$0xff]  }
  0x16   :  { %v1049_v3 = vld [vmem:[#allocation2 + $0x80] sm:$0xff]   ;;  %940 = vmatprep.subr.bf16.mxu1 %v1048_v2  ;;  %920 = vmatprep.subr.bf16.mxu0 %v1050_v4  ;;  %v1053_v7 = vld [vmem:[#allocation2 + $0x88] sm:$0xff]   ;;  %v1056_v10 = vld [vmem:[#allocation2 + $0xd0] sm:$0xff]  }
  0x17   :  { %941 = vmatpush3.bf16.msra.mxu1 %v1049_v3  ;;  %v1057_v11 = vld [vmem:[#allocation2 + $0x90] sm:$0xff]   ;;  %v1058_v12 = vld [vmem:[#allocation2 + $0x58] sm:$0xff]   ;;  %v1062_v16 = vld [vmem:[#allocation2 + $0x60] sm:$0xff]  }
  0x18   :  { %942 = vmatprep.subr.bf16.mxu1 %v1052_v6  ;;  %v1059_v13 = vld [vmem:[#allocation2 + $0x18] sm:$0xff]   ;;  %v1063_v17 = vld [vmem:[#allocation2 + $0x20] sm:$0xff]   ;;  %v1066_v20 = vld [vmem:[#allocation2 + $0x68] sm:$0xff]  }
  0x19   :  { %921 = vmatpush3.bf16.msra.mxu0 %v1051_v5  ;;  %v1060_v14 = vld [vmem:[#allocation2 + $0xd8] sm:$0xff]   ;;  %v1064_v18 = vld [vmem:[#allocation2 + $0xe0] sm:$0xff]   ;;  %v1067_v21 = vld [vmem:[#allocation2 + $0x28] sm:$0xff]  }
  0x1a   :  { %922 = vmatprep.subr.bf16.mxu0 %v1054_v8  ;;  %v1061_v15 = vld [vmem:[#allocation2 + $0x98] sm:$0xff]   ;;  %v1065_v19 = vld [vmem:[#allocation2 + $0xa0] sm:$0xff]   ;;  %v1068_v22 = vld [vmem:[#allocation2 + $0xe8] sm:$0xff]  }
  0x1b   :  { %943 = vmatpush3.bf16.msra.mxu1 %v1053_v7  ;;  %v1069_v23 = vld [vmem:[#allocation2 + $0xa8] sm:$0xff]   ;;  %v1070_v24 = vld [vmem:[#allocation2 + $0x70] sm:$0xff]   ;;  %v1074_v28 = vld [vmem:[#allocation2 + $0x78] sm:$0xff]  }
  0x1c   :  { %944 = vmatprep.subr.bf16.mxu1 %v1056_v10  ;;  %v1071_v25 = vld [vmem:[#allocation2 + $0x30] sm:$0xff]   ;;  %v1075_v29 = vld [vmem:[#allocation2 + $0x38] sm:$0xff]   ;;  %v43_v31 = vld [vmem:[%s1333_s0 + $0x8] sm:$0xff] }
  0x1d   :  { %923 = vmatpush3.bf16.msra.mxu0 %v1055_v9  ;;  %v1072_v26 = vld [vmem:[#allocation2 + $0xf0] sm:$0xff]   ;;  %v1076_v30 = vld [vmem:[#allocation2 + $0xf8] sm:$0xff]   ;;  %v50_v32 = vld [vmem:[%s1333_s0 + $0x40] sm:$0xff] }
  0x1e   :  { %924 = vmatprep.subr.bf16.mxu0 %v1058_v12  ;;  %v1073_v27 = vld [vmem:[#allocation2 + $0xb0] sm:$0xff]   ;;  %v57_v33 = vpack.c.bf16 %v50_v32, %v43_v31  ;;  %v1077_v34 = vld [vmem:[#allocation2 + $0xb8] sm:$0xff]   ;;  %v42_v35 = vld [vmem:[%s1333_s0] sm:$0xff] }
  0x1f   :  { %945 = vmatpush3.bf16.msra.mxu1 %v1057_v11  ;;  %v49_v36 = vld [vmem:[%s1333_s0 + $0x38] sm:$0xff]  ;;  %v1078_v38 = vld [vmem:[#allocation2 + $0x140] sm:$0xff]   ;;  %v52_v40 = vld [vmem:[%s1333_s0 + $0x50] sm:$0xff] }
  0x20   :  { %946 = vmatprep.subr.bf16.mxu1 %v1060_v14  ;;  %498 = vmatprep.mubr.bf16.mxu0 %v57_v33  ;;  %v56_v37 = vpack.c.bf16 %v49_v36, %v42_v35  ;;  %v45_v39 = vld [vmem:[%s1333_s0 + $0x18] sm:$0xff]  ;;  %v1079_v42 = vld [vmem:[#allocation2 + $0x100] sm:$0xff]   ;;  %v44_v44 = vld [vmem:[%s1333_s0 + $0x10] sm:$0xff] }
  0x21   :  { %925 = vmatpush3.bf16.msra.mxu0 %v1059_v13  ;;  %v59_v41 = vpack.c.bf16 %v52_v40, %v45_v39  ;;  %v51_v45 = vld [vmem:[%s1333_s0 + $0x48] sm:$0xff]  ;;  %v1082_v49 = vld [vmem:[#allocation2 + $0x150] sm:$0xff]   ;;  %v1084_v51 = vld [vmem:[#allocation2 + $0x158] sm:$0xff]  }
  0x22   :  { %926 = vmatprep.subr.bf16.mxu0 %v1062_v16  ;;  %v58_v46 = vpack.c.bf16 %v51_v45, %v44_v44  ;;  %v1080_v47 = vld [vmem:[#allocation2 + $0x148] sm:$0xff]   ;;  %v1083_v50 = vld [vmem:[#allocation2 + $0x110] sm:$0xff]   ;;  %v1085_v52 = vld [vmem:[#allocation2 + $0x118] sm:$0xff]  }
  0x23   :  { %947 = vmatpush3.bf16.msra.mxu1 %v1061_v15  ;;  %539 = vmatprep.mubr.bf16.mxu1 %v59_v41  ;;  %v1081_v48 = vld [vmem:[#allocation2 + $0x108] sm:$0xff]   ;;  %v1086_v53 = vld [vmem:[#allocation2 + $0x160] sm:$0xff]   ;;  %v1090_v59 = vld [vmem:[#allocation2 + $0x170] sm:$0xff]  }
  0x24   :  { %948 = vmatprep.subr.bf16.mxu1 %v1064_v18  ;;  %v1087_v54 = vld [vmem:[#allocation2 + $0x120] sm:$0xff]   ;;  %v1088_v55 = vld [vmem:[#allocation2 + $0x168] sm:$0xff]   ;;  %v48_v62 = vld [vmem:[%s1333_s0 + $0x30] sm:$0xff] }
  0x25   :  { %927 = vmatpush3.bf16.msra.mxu0 %v1063_v17  ;;  %v1094_v56 = vld [vmem:[#allocation2 + $0x180] sm:$0xff]   ;;  %v47_v57 = vld [vmem:[%s1333_s0 + $0x28] sm:$0xff]  ;;  %v1091_v1 = vld [vmem:[#allocation2 + $0x130] sm:$0xff]  }
  0x26   :  { %928 = vmatprep.subr.bf16.mxu0 %v1066_v20  ;;  %v1089_v58 = vld [vmem:[#allocation2 + $0x128] sm:$0xff]   ;;  %v54_v60 = vld [vmem:[%s1333_s0 + $0x60] sm:$0xff]  ;;  %v1092_v2 = vld [vmem:[#allocation2 + $0x178] sm:$0xff]  }
  0x27   :  { %949 = vmatpush3.bf16.msra.mxu1 %v1065_v19  ;;  %v61_v61 = vpack.c.bf16 %v54_v60, %v47_v57  ;;  %v55_v63 = vld [vmem:[%s1333_s0 + $0x68] sm:$0xff]  ;;  %v1093_v3 = vld [vmem:[#allocation2 + $0x138] sm:$0xff]   ;;  %v46_v4 = vld [vmem:[%s1333_s0 + $0x20] sm:$0xff] }
  0x28   :  { %950 = vmatprep.subr.bf16.mxu1 %v1068_v22  ;;  %v62_v0 = vpack.c.bf16 %v55_v63, %v48_v62  ;;  %v53_v5 = vld [vmem:[%s1333_s0 + $0x58] sm:$0xff]  ;;  %v1095_v7 = vld [vmem:[%s1336_s3] sm:$0xff]   ;;  %v1096_v8 = vld [vmem:[%s1336_s3 + $0x8] sm:$0xff]  }
  0x29   :  { %929 = vmatpush3.bf16.msra.mxu0 %v1067_v21  ;;  %v60_v6 = vpack.c.bf16 %v53_v5, %v46_v4  ;;  %v1097_v9 = vld [vmem:[%s1336_s3 + $0x10] sm:$0xff]   ;;  %v1098_v10 = vld [vmem:[%s1336_s3 + $0x18] sm:$0xff]   ;;  %v1099_v11 = vld [vmem:[%s1336_s3 + $0x20] sm:$0xff]  }
  0x2a   :  { %930 = vmatprep.subr.bf16.mxu0 %v1070_v24  ;;  %v1100_v12 = vld [vmem:[%s1336_s3 + $0x28] sm:$0xff]   ;;  %v1101_v13 = vld [vmem:[%s1336_s3 + $0x30] sm:$0xff]   ;;  %v1102_v14 = vld [vmem:[%s1336_s3 + $0x38] sm:$0xff]  }
  0x2b   :  { %951 = vmatpush3.bf16.msra.mxu1 %v1069_v23  ;;  %v1103_v15 = vld [vmem:[%s1338_s5] sm:$0xff]   ;;  %v1104_v16 = vld [vmem:[%s1338_s5 + $0x8] sm:$0xff]  }
  0x2c   :  { %952 = vmatprep.subr.bf16.mxu1 %v1072_v26  ;;  %v852_v18 = vld [vmem:[%s1335_s2] ss:$0 sm:$0xff] }
  0x2d   :  { %931 = vmatpush3.bf16.msra.mxu0 %v1071_v25 }
  0x2e   :  { %932 = vmatprep.subr.bf16.mxu0 %v1074_v28 }
  0x2f   :  { %953 = vmatpush3.bf16.msra.mxu1 %v1073_v27 }
  0x30   :  { %954 = vmatprep.subr.bf16.mxu1 %v1076_v30 }
  0x31   :  { %933 = vmatpush3.bf16.msra.mxu0 %v1075_v29 }
  0x32   :  { %962 = vmatprep.subr.bf16.mxu0 %v1078_v38 }
  0x33   :  { %955 = vmatpush3.bf16.msra.mxu1 %v1077_v34 }
  0x34   :  { %1000 = vmatprep.subr.bf16.mxu1 %v1158_v43  ;;  %499 = vmatmul.mubr.bf16.vlgmr.msra.gmra.mrb[0].mxu0 %v56_v37 }
  0x35   :  { %963 = vmatpush3.bf16.msra.mxu0 %v1079_v42  ;;  %580 = vmatprep.mubr.bf16.mxu0 %v61_v61 }
  0x36   :  { %540 = vmatmul.mubr.bf16.vlgmr.msra.gmra.mrb[0].mxu1 %v58_v46  ;;  %964 = vmatprep.subr.bf16.mxu0 %v1080_v47 }
  0x37   :  { %1002 = vmatprep.mubr.msk.bf16.mxu1 %vm1159_vm0, %v1158_v43  ;;  %1001 = vmatpush3.bf16.msra.mxu1 %v1094_v56 }
  0x38   :  { %1006 = vmatprep.subr.bf16.mxu1 %v1158_v43 }
  0x39   :  { %965 = vmatpush3.bf16.msra.mxu0 %v1081_v48 }
  0x3a   :  { %966 = vmatprep.subr.bf16.mxu0 %v1082_v49 }
  0x3d   :  { %967 = vmatpush3.bf16.msra.mxu0 %v1083_v50 }
  0x3e   :  { %968 = vmatprep.subr.bf16.mxu0 %v1084_v51  ;;  %1003 = vmatmul.mubr.msk.bf16.vlgmr.msra.gmra.mrb[4].mxu1 %vm462_vm1, %v62_v0 }
  0x3f   :  { %1022 = vmatprep.mubr.msk.bf16.mxu1 %vm1159_vm0, %v1158_v43  ;;  %1007 = vmatpush3.bf16.msra.mxu1 %v1095_v7 }
  0x40   :  { %1008 = vmatprep.subr.bf16.mxu1 %v1158_v43 }
  0x41   :  { %969 = vmatpush3.bf16.msra.mxu0 %v1085_v52  ;;  %v1105_v52 = vld [vmem:[%s1338_s5 + $0x10] sm:$0xff]  }
  0x42   :  { %970 = vmatprep.subr.bf16.mxu0 %v1086_v53  ;;  %v1106_v53 = vld [vmem:[%s1338_s5 + $0x18] sm:$0xff]   ;;  %s1160_s5 = smov [#allocation5]  }
  0x43   :  { %1009 = vmatpush3.bf16.msra.mxu1 %v1096_v8  ;;  %s840_s21 = sshll.u32 %s1160_s5, 4  ;;  %s841_s21 = int_to_ptr.vmem [resolvable:$true] %s840_s21 }
  0x44   :  { %1010 = vmatprep.subr.bf16.mxu1 %v1158_v43  ;;  %p1134_p9 = scmp.lt.s32.totalorder %s841_s21, %s841_s21 }
  0x45   :  { %971 = vmatpush3.bf16.msra.mxu0 %v1087_v54  ;;  %v903_v54 = vld [vmem:[%s1337_s4] ss:$0 sm:$0xff]  ;;  %s1129_s4 = scalar_lea.vmem %s841_s21, 256 }
  0x46   :  { %972 = vmatprep.subr.bf16.mxu0 %v1088_v55  ;;  %p1130_p8 = scmp.ne.s32.totalorder %s841_s21, %s1129_s4  ;;  %p1135_p10 = scmp.lt.s32.totalorder %s1129_s4, %s1129_s4 }
  0x47   :  { %1011 = vmatpush3.bf16.msra.mxu1 %v1097_v9 }
  0x48   :  { %1012 = vmatprep.subr.bf16.mxu1 %v1158_v43  ;;  %p1136_p11 = por %p1135_p10, %p1134_p9 }
  0x49   :  { %973 = vmatpush3.bf16.msra.mxu0 %v1089_v58 }
  0x4a   :  { %974 = vmatprep.subr.bf16.mxu0 %v1090_v59  ;;  %p1137_p12 = pnand %p1136_p11, %p1130_p8 }
  0x4b   :  { %1013 = vmatpush3.bf16.msra.mxu1 %v1098_v10 }
  0x4c   :  { %1014 = vmatprep.subr.bf16.mxu1 %v1158_v43 }
  0x4d   :  { %975 = vmatpush3.bf16.msra.mxu0 %v1091_v1 }
  0x4e   :  { %976 = vmatprep.subr.bf16.mxu0 %v1092_v2 }
  0x4f   :  { %1015 = vmatpush3.bf16.msra.mxu1 %v1099_v11 }
  0x50   :  { %1016 = vmatprep.subr.bf16.mxu1 %v1158_v43 }
  0x51   :  { %977 = vmatpush3.bf16.msra.mxu0 %v1093_v3 }
  0x52   :  { %1026 = vmatprep.subr.bf16.mxu0 %v1158_v43 }
  0x53   :  { %1017 = vmatpush3.bf16.msra.mxu1 %v1100_v12 }
  0x54   :  { %581 = vmatmul.mubr.bf16.vlgmr.msra.gmra.mrb[4].mxu0 %v60_v6  ;;  %1018 = vmatprep.subr.bf16.mxu1 %v1158_v43 }
  0x55   :  { %1034 = vmatprep.mubr.msk.bf16.mxu0 %vm1159_vm0, %v1158_v43  ;;  %1027 = vmatpush3.bf16.msra.mxu0 %v1103_v15 }
  0x56   :  { %1028 = vmatprep.subr.bf16.mxu0 %v1158_v43 }
  0x57   :  { %1019 = vmatpush3.bf16.msra.mxu1 %v1101_v13 }
  0x58   :  { %1020 = vmatprep.subr.bf16.mxu1 %v1158_v43 }
  0x59   :  { %1029 = vmatpush3.bf16.msra.mxu0 %v1104_v16 }
  0x5a   :  { %1030 = vmatprep.subr.bf16.mxu0 %v1158_v43 }
  0x5b   :  { %1021 = vmatpush3.bf16.msra.mxu1 %v1102_v14 }
  0x5d   :  { %1031 = vmatpush3.bf16.msra.mxu0 %v1105_v52 }
  0x5e   :  { %1032 = vmatprep.subr.bf16.mxu0 %v1158_v43  ;;  %v912_v43 = vld [vmem:[%s1339_s6] ss:$0 sm:$0xff] }
  0x61   :  { %1033 = vmatpush3.bf16.msra.mxu0 %v1106_v53 }
 0x107   :  { %v934_v17 = vpop.f32.mrb[0].mxu0 }
 0x108   :  { %v935_v19 = vpop.f32.mrb[1].mxu0 }
 0x109   :  { %v936_v20 = vadd.f32 %v935_v19, %v934_v17  ;;  %v937_v21 = vpop.f32.mrb[2].mxu0  ;;  %v956_v22 = vpop.f32.mrb[0].mxu1 }
 0x10a   :  { %v938_v23 = vpop.f32.mrb[3].mxu0  ;;  %v957_v26 = vpop.f32.mrb[1].mxu1 }
 0x10b   :  { %v501_v24 = vadd.f32 %v936_v20, %v852_v18  ;;  %v939_v25 = vadd.f32 %v938_v23, %v937_v21  ;;  %v958_v27 = vadd.f32 %v957_v26, %v956_v22  ;;  %v959_v28 = vpop.f32.mrb[2].mxu1 }
 0x10c   :  { %v960_v30 = vpop.f32.mrb[3].mxu1 }
 0x10d   :  { %v504_v29 = vadd.f32 %v939_v25, %v852_v18  ;;  %v542_v31 = vadd.f32 %v958_v27, %v501_v24  ;;  %v961_v32 = vadd.f32 %v960_v30, %v959_v28 }
 0x10f   :  { %v545_v33 = vadd.f32 %v961_v32, %v504_v29 }
 0x111   :  { %v623_v34 = vpop.f32.mrb[4].mxu1 }
 0x112   :  { %v1004_v35 = vpop.f32.mrb[5].mxu1 }
 0x113   :  { %v626_v36 = vpop.f32.mrb[6].mxu1 }
 0x114   :  { %v1005_v37 = vpop.f32.mrb[7].mxu1 }
 0x127   :  { %v978_v38 = vpop.f32.mrb[4].mxu0 }
 0x128   :  { %v979_v39 = vpop.f32.mrb[5].mxu0 }
 0x129   :  { %v980_v40 = vadd.f32 %v979_v39, %v978_v38  ;;  %v981_v41 = vpop.f32.mrb[6].mxu0 }
 0x12a   :  { %v982_v42 = vpop.f32.mrb[7].mxu0 }
 0x12b   :  { %v583_v44 = vadd.f32 %v980_v40, %v542_v31  ;;  %v983_v45 = vadd.f32 %v982_v42, %v981_v41 }
 0x12d   :  { %v624_v46 = vadd.f32 %v623_v34, %v583_v44  ;;  %v586_v47 = vadd.f32 %v983_v45, %v545_v33 }
 0x12f   :  { %v627_v48 = vadd.f32 %v626_v36, %v586_v47  ;;  %v630_v49 = vmax.f32 %v624_v46, 0.0 }
 0x131   :  { %v631_v50 = vmax.f32 %v627_v48, 0.0 }
 0x133   :  { %v632_v51 = vpack.c.bf16 %v631_v50, %v630_v49 }
 0x135   :  { %1023 = vmatmul.mubr.bf16.vlgmr.msra.gmra.mrb[8].mxu1 %v632_v51 }
 0x208   :  { %v738_v55 = vpop.f32.mrb[8].mxu1 }
 0x209   :  { %v739_v56 = vadd.f32 %v903_v54, %v738_v55  ;;  %v1024_v57 = vpop.f32.mrb[9].mxu1 }
 0x20a   :  { %v741_v58 = vpop.f32.mrb[10].mxu1 }
 0x20b   :  { %v742_v59 = vadd.f32 %v903_v54, %v741_v58  ;;  %v1025_v60 = vpop.f32.mrb[11].mxu1  ;;  %v745_v61 = vmax.f32 %v739_v56, 0.0 }
 0x20d   :  { %v746_v62 = vmax.f32 %v742_v59, 0.0 }
 0x20f   :  { %v747_v63 = vpack.c.bf16 %v746_v62, %v745_v61 }
 0x211   :  { %1035 = vmatmul.mubr.msk.bf16.vlgmr.msra.gmra.mrb[8].mxu0 %vm787_vm2, %v747_v63 }
 0x2e4   :  { %v825_v0 = vpop.f32.mrb[8].mxu0 }
 0x2e5   :  { %v826_v1 = vadd.f32 %v912_v43, %v825_v0  ;;  %v1036_v2 = vpop.f32.mrb[9].mxu0 }
 0x2e6   :  { %v828_v3 = vpop.f32.mrb[10].mxu0 }
 0x2e7   :  { %833 = vst.msk [vmem:[#allocation5] sm:$0xff] %vm832_vm3, %v826_v1  ;;  %v829_v4 = vadd.f32 %v912_v43, %v828_v3  ;;  %v1037_v5 = vpop.f32.mrb[11].mxu0 }
 0x2e9   :  { %834 = vst.msk [vmem:[#allocation5 + $0x8] sm:$0xff] %vm832_vm3, %v829_v4 }
 0x2ea   :  { %1140 = shalt.err (!%p1137_p12)
}
 0x2eb   :  { %s1141_s22 = scalar_lea.hbm %s1340_s7, 256 }
 0x2ec   :  { %p1142_p13 = scmp.ne.s32.totalorder %s1340_s7, %s1141_s22  ;;  %p1145_p0 = scmp.lt.u32.totalorder %s1141_s22, %s1340_s7 }
 0x2ee   :  { %p1147_p1 = pnand %p1145_p0, %p1142_p13 }
 0x2f0   :  { %1150 = shalt.err (!%p1147_p1)
}
 0x2f1   :  { %s1161_s27 = smov 128   ;;  %s1162_s28 = smov 8  }
 0x2f2   :  { %846 = dma.vmem_to_hbm [thread:$0]  %s841_s21, 256, %s1340_s7, [#allocation4], %s1161_s27, %s1161_s27, %s1162_s28  }
 0x2f3   :  { %1153 = dma.done.wait [#allocation4], 256  }
 0x2f4   :  { %1154 = vsyncadd [#allocation4], 4294967040 }
 0x2f5   :  { %850 = vsyncpa [#allocation3], 1 }
 0x2f6   :  { %851 = vsyncpa [#allocation4], 1 }

</bundles_post_ra>
